<compile_context>
chip_gen: v6e
topology: v6e:2x2x1
jax: 0.10.0
libtpu: 0.0.40
codegen_flags: <defaults>
</compile_context>

<pallas_src>
import functools

import jax
import jax.numpy as jnp
from jax import lax
from jax.experimental import pallas as pl
from jax.experimental.pallas import tpu as pltpu


# ----------------------------------------------------------------------------
# Fused kernel: whole InceptionV2 module A for one batch image.
# ----------------------------------------------------------------------------

def _inception_a_kernel(x_ref, col_ref, w1_ref, b1_ref, w23_ref, b23_ref,
                        w3b_ref, b3b_ref, w4_ref, b4_ref,
                        o_ref,
                        pad23_ref, pad3b_ref, padm_ref,
                        *, c1, c2, c3, W, OFF):
    HW = x_ref.shape[2]

    x = x_ref[0]                      # (Cin, HW), resident in VMEM
    col = col_ref[...]                # (1, HW) int32: w coordinate of each pixel

    def fill_padded(pad_ref, interior, fill):
        # Flat padded scratch: [0, OFF) halo | [OFF, OFF+HW) data | tail halo.
        # Interior store is lane-aligned (OFF is a multiple of 128); the two
        # halo strips are filled once per step (megacore-safe, no double
        # interior write).
        C, flat = pad_ref.shape
        pad_ref[:, pl.ds(0, OFF)] = jnp.full((C, OFF), fill, jnp.float32)
        pad_ref[:, pl.ds(OFF, HW)] = interior
        tail = flat - OFF - HW
        pad_ref[:, pl.ds(OFF + HW, tail)] = jnp.full((C, tail), fill, jnp.float32)

    def shifted_taps(pad_ref, fill):
        # 9 spatially shifted views of the padded input; +/-1 width shifts wrap
        # across rows in the flat layout, so those columns are masked to `fill`.
        C = pad_ref.shape[0]
        colb = jnp.broadcast_to(col, (C, HW))
        keep_l = colb != 0              # valid positions for a dw = -1 read
        keep_r = colb != (W - 1)        # valid positions for a dw = +1 read
        taps = []
        for dh in (-1, 0, 1):
            for dw in (-1, 0, 1):
                v = pad_ref[:, pl.ds(OFF + dh * W + dw, HW)]
                if dw == -1:
                    v = jnp.where(keep_l, v, fill)
                elif dw == 1:
                    v = jnp.where(keep_r, v, fill)
                taps.append(v)
        return taps

    def conv3x3_relu(pad_ref, w_ref, b_ref):
        # im2col: one fat-K matmul (K = 9*Cin_conv) instead of 9 thin taps.
        patches = jnp.concatenate(shifted_taps(pad_ref, 0.0), axis=0)
        y = jnp.dot(w_ref[...], patches, preferred_element_type=jnp.float32)
        return jnp.maximum(y + b_ref[...], 0.0)

    # ---- branch1 + branch2-reduce + branch3-reduce as one 1x1 GEMM ----------
    y1 = jnp.dot(w1_ref[...], x, preferred_element_type=jnp.float32)
    y1 = jnp.maximum(y1 + b1_ref[...], 0.0)          # (c1 + c2r + c3r, HW)
    o_ref[0, 0:c1, :] = y1[:c1]                       # branch1 -> direct store

    # ---- fused (branch2 3x3) + (branch3 first 3x3): block-diag weight -------
    fill_padded(pad23_ref, y1[c1:], 0.0)
    y23 = conv3x3_relu(pad23_ref, w23_ref, b23_ref)   # (c2 + c3, HW)
    o_ref[0, c1:c1 + c2, :] = y23[:c2]                # branch2 -> direct store

    # ---- branch3 second 3x3 --------------------------------------------------
    fill_padded(pad3b_ref, y23[c2:], 0.0)
    o3 = conv3x3_relu(pad3b_ref, w3b_ref, b3b_ref)
    o_ref[0, c1 + c2:c1 + c2 + c3, :] = o3            # branch3 -> direct store

    # ---- branch4: 3x3 max-pool (stride 1, pad 1) -> 1x1 ----------------------
    fill_padded(padm_ref, x, -jnp.inf)
    taps = shifted_taps(padm_ref, -jnp.inf)
    m = taps[0]
    for v in taps[1:]:
        m = jnp.maximum(m, v)
    o4 = jnp.dot(w4_ref[...], m, preferred_element_type=jnp.float32)
    o_ref[0, c1 + c2 + c3:, :] = jnp.maximum(o4 + b4_ref[...], 0.0)


# ----------------------------------------------------------------------------
# Wrapper: BN folding, weight flipping/packing, single pallas_call.
# ----------------------------------------------------------------------------

def inception_v2_module_a(x_nchw, params):
    x = x_nchw.astype(jnp.float32)
    N, Cin, H, W = x.shape
    HW = H * W
    x_flat = x.reshape(N, Cin, HW)                    # NCHW -> (N, C, H*W), free
    p = params

    def taps_and_bias(prm):
        # Fold BN scale into the conv weight; return per-tap (cout, cin)
        # matrices (flipped layout) + (cout, 1) bias.
        w = prm["w"] * prm["scale"]                   # (kh, kw, cin, cout)
        kh, kw, cin, cout = w.shape
        taps = [jnp.transpose(w[i, j]) for i in range(kh) for j in range(kw)]
        return taps, prm["bias"].reshape(cout, 1)

    (t_b1,), bias_b1 = taps_and_bias(p["b1"])
    (t_b2r,), bias_b2r = taps_and_bias(p["b2_reduce"])
    (t_b3r,), bias_b3r = taps_and_bias(p["b3_reduce"])
    t2, bias2 = taps_and_bias(p["b2_conv"])
    t3a, bias3a = taps_and_bias(p["b3_conv1"])
    t3b, bias3b = taps_and_bias(p["b3_conv2"])
    (t_b4,), bias4 = taps_and_bias(p["b4_conv"])

    c1, c2r, c3r = t_b1.shape[0], t_b2r.shape[0], t_b3r.shape[0]
    c2, c3, c4 = t2[0].shape[0], t3b[0].shape[0], t_b4.shape[0]
    ctot = c1 + c2 + c3 + c4

    # Fuse the three 1x1-on-x convs into one GEMM.
    w1 = jnp.concatenate([t_b1, t_b2r, t_b3r], axis=0)        # (c1+c2r+c3r, Cin)
    b1 = jnp.concatenate([bias_b1, bias_b2r, bias_b3r], axis=0)

    # Fuse branch2-3x3 and branch3-first-3x3: block-diagonal per-tap weights,
    # im2col K = 9*(c2r+c3r).
    z_top = jnp.zeros((c2, c3r), jnp.float32)
    z_bot = jnp.zeros((c3, c2r), jnp.float32)
    blocks = [jnp.concatenate(
        [jnp.concatenate([t2[t], z_top], axis=1),
         jnp.concatenate([z_bot, t3a[t]], axis=1)], axis=0) for t in range(9)]
    w23 = jnp.concatenate(blocks, axis=1)                     # (c2+c3, 9*(c2r+c3r))
    b23 = jnp.concatenate([bias2, bias3a], axis=0)

    w3b = jnp.concatenate(t3b, axis=1)                        # (c3, 9*c3)
    b3b = bias3b
    w4, b4 = t_b4, bias4                                      # (c4, Cin), (c4, 1)

    # Column-index vector for masking the +/-1 width-shift row wraps.
    col_ids = (jnp.arange(HW, dtype=jnp.int32) % jnp.int32(W)).reshape(1, HW)

    # Flat padded scratch geometry: lane-aligned interior offset.
    OFF = ((W + 1 + 127) // 128) * 128
    FLAT = OFF + HW + OFF

    kernel = functools.partial(_inception_a_kernel,
                               c1=c1, c2=c2, c3=c3, W=W, OFF=OFF)

    def full_spec(a):
        return pl.BlockSpec(a.shape, lambda n: (0,) * a.ndim)

    out = pl.pallas_call(
        kernel,
        out_shape=jax.ShapeDtypeStruct((N, ctot, HW), jnp.float32),
        grid=(N,),
        in_specs=[
            pl.BlockSpec((1, Cin, HW), lambda n: (n, 0, 0)),
            full_spec(col_ids),
            full_spec(w1), full_spec(b1),
            full_spec(w23), full_spec(b23),
            full_spec(w3b), full_spec(b3b),
            full_spec(w4), full_spec(b4),
        ],
        out_specs=pl.BlockSpec((1, ctot, HW), lambda n: (n, 0, 0)),
        scratch_shapes=[
            pltpu.VMEM((c2r + c3r, FLAT), jnp.float32),  # fused 3x3 halo (zeros)
            pltpu.VMEM((c3, FLAT), jnp.float32),         # branch3 2nd 3x3 halo
            pltpu.VMEM((Cin, FLAT), jnp.float32),        # max-pool halo (-inf)
        ],
        compiler_params=pltpu.CompilerParams(
            dimension_semantics=("parallel",)),
    )(x_flat, col_ids, w1, b1, w23, b23, w3b, b3b, w4, b4)

    return out.reshape(N, ctot, H, W)                  # (N, C, H*W) -> NCHW, free


# ----------------------------------------------------------------------------
# Parameters: deterministic synthetic ConvBNReLU params with BN pre-folded.
# ----------------------------------------------------------------------------

def make_convbnrelu_params(key, cin, cout, ksize):
    ks = jax.random.split(key, 6)
    w = 0.1 * jax.random.normal(ks[0], (ksize, ksize, cin, cout), jnp.float32)
    conv_b = 0.1 * jax.random.normal(ks[1], (cout,), jnp.float32)
    gamma = 1.0 + 0.1 * jax.random.normal(ks[2], (cout,), jnp.float32)
    beta = 0.1 * jax.random.normal(ks[3], (cout,), jnp.float32)
    mean = 0.1 * jax.random.normal(ks[4], (cout,), jnp.float32)
    var = jnp.abs(jax.random.normal(ks[5], (cout,), jnp.float32)) + 0.5
    eps = 1e-5
    scale = gamma / jnp.sqrt(var + eps)
    bias = beta + scale * (conv_b - mean)
    return {"w": w, "scale": scale, "bias": bias}


def init_inception_params(key, in_ch, c1, c2r, c2, c3r, c3, c4):
    keys = jax.random.split(key, 7)
    return {
        "b1": make_convbnrelu_params(keys[0], in_ch, c1, 1),
        "b2_reduce": make_convbnrelu_params(keys[1], in_ch, c2r, 1),
        "b2_conv": make_convbnrelu_params(keys[2], c2r, c2, 3),
        "b3_reduce": make_convbnrelu_params(keys[3], in_ch, c3r, 1),
        "b3_conv1": make_convbnrelu_params(keys[4], c3r, c3, 3),
        "b3_conv2": make_convbnrelu_params(keys[5], c3, c3, 3),
        "b4_conv": make_convbnrelu_params(keys[6], in_ch, c4, 1),
    }


# ----------------------------------------------------------------------------
# Pure-JAX reference for correctness.
# ----------------------------------------------------------------------------

def _ref_convbnrelu(x, prm, padding):
    y = lax.conv_general_dilated(
        x, prm["w"], window_strides=(1, 1), padding=padding,
        dimension_numbers=("NHWC", "HWIO", "NHWC"))
    return jnp.maximum(y * prm["scale"] + prm["bias"], 0.0)


def inception_v2_module_a_ref(x_nchw, params):
    x = jnp.transpose(x_nchw, (0, 2, 3, 1))
    p = params
    b1 = _ref_convbnrelu(x, p["b1"], "VALID")
    b2 = _ref_convbnrelu(x, p["b2_reduce"], "VALID")
    b2 = _ref_convbnrelu(b2, p["b2_conv"], "SAME")
    b3 = _ref_convbnrelu(x, p["b3_reduce"], "VALID")
    b3 = _ref_convbnrelu(b3, p["b3_conv1"], "SAME")
    b3 = _ref_convbnrelu(b3, p["b3_conv2"], "SAME")
    mp = lax.reduce_window(x, -jnp.inf, lax.max, (1, 3, 3, 1), (1, 1, 1, 1),
                           [(0, 0), (1, 1), (1, 1), (0, 0)])
    b4 = _ref_convbnrelu(mp, p["b4_conv"], "VALID")
    out = jnp.concatenate([b1, b2, b3, b4], axis=-1)
    return jnp.transpose(out, (0, 3, 1, 2))


# ----------------------------------------------------------------------------

if __name__ == "__main__":
    key = jax.random.PRNGKey(0)
    k_x, k_p = jax.random.split(key)

    # Small shapes: batch=2, in_channels=4, spatial=16x16 (NCHW like PyTorch).
    N, Cin, H, W = 2, 4, 16, 16
    x = jax.random.normal(k_x, (N, Cin, H, W), jnp.float32)

    # InceptionV2ModuleA(in=4, out1=8, out2reduce=4, out2=8, out3reduce=4,
    #                    out3=8, out4=8) -> output channels = 32
    params = init_inception_params(k_p, Cin, 8, 4, 8, 4, 8, 8)

    fwd = jax.jit(functools.partial(inception_v2_module_a, params=params))
    out = jax.block_until_ready(fwd(x))

    ref = jax.block_until_ready(inception_v2_module_a_ref(x, params))
    assert out.shape == (N, 32, H, W), out.shape
    assert jnp.allclose(out, ref, atol=1e-4, rtol=1e-4), \
        float(jnp.max(jnp.abs(out - ref)))

    print("KERNEL_OK")
</pallas_src>

<mosaic_0001>
module attributes {stable_mosaic.version = 11 : i64} {
  func.func @_inception_a_kernel(%arg0: i32, %arg1: memref<1x4x256xf32, #tpu.memory_space<vmem>>, %arg2: memref<1x256xi32, #tpu.memory_space<vmem>>, %arg3: memref<16x4xf32, #tpu.memory_space<vmem>>, %arg4: memref<16x1xf32, #tpu.memory_space<vmem>>, %arg5: memref<16x72xf32, #tpu.memory_space<vmem>>, %arg6: memref<16x1xf32, #tpu.memory_space<vmem>>, %arg7: memref<8x72xf32, #tpu.memory_space<vmem>>, %arg8: memref<8x1xf32, #tpu.memory_space<vmem>>, %arg9: memref<8x4xf32, #tpu.memory_space<vmem>>, %arg10: memref<8x1xf32, #tpu.memory_space<vmem>>, %arg11: memref<1x32x256xf32, #tpu.memory_space<vmem>>, %arg12: memref<8x512xf32, #tpu.memory_space<vmem>>, %arg13: memref<8x512xf32, #tpu.memory_space<vmem>>, %arg14: memref<4x512xf32, #tpu.memory_space<vmem>>) attributes {dimension_semantics = [#tpu.dimension_semantics<parallel>], iteration_bounds = array<i64: 2>, scalar_prefetch = 0 : i64, scratch_operands = 3 : i64, tpu.core_type = #tpu.core_type<tc>, window_params = [{transform_indices = @transform_0, window_bounds = array<i64: 1, 4, 256>}, {pipeline_mode = #tpu.pipeline_mode<synchronous>, transform_indices = @transform_1, window_bounds = array<i64: 1, 256>}, {pipeline_mode = #tpu.pipeline_mode<synchronous>, transform_indices = @transform_2, window_bounds = array<i64: 16, 4>}, {pipeline_mode = #tpu.pipeline_mode<synchronous>, transform_indices = @transform_3, window_bounds = array<i64: 16, 1>}, {pipeline_mode = #tpu.pipeline_mode<synchronous>, transform_indices = @transform_4, window_bounds = array<i64: 16, 72>}, {pipeline_mode = #tpu.pipeline_mode<synchronous>, transform_indices = @transform_5, window_bounds = array<i64: 16, 1>}, {pipeline_mode = #tpu.pipeline_mode<synchronous>, transform_indices = @transform_6, window_bounds = array<i64: 8, 72>}, {pipeline_mode = #tpu.pipeline_mode<synchronous>, transform_indices = @transform_7, window_bounds = array<i64: 8, 1>}, {pipeline_mode = #tpu.pipeline_mode<synchronous>, transform_indices = @transform_8, window_bounds = array<i64: 8, 4>}, {pipeline_mode = #tpu.pipeline_mode<synchronous>, transform_indices = @transform_9, window_bounds = array<i64: 8, 1>}, {transform_indices = @transform_10, window_bounds = array<i64: 1, 32, 256>}]} {
    %c0 = arith.constant 0 : index
    %c0_0 = arith.constant 0 : index
    %c0_1 = arith.constant 0 : index
    %0 = vector.load %arg1[%c0, %c0_0, %c0_1] : memref<1x4x256xf32, #tpu.memory_space<vmem>>, vector<1x4x256xf32>
    %1 = vector.shape_cast %0 : vector<1x4x256xf32> to vector<4x256xf32>
    %c0_2 = arith.constant 0 : index
    %c0_3 = arith.constant 0 : index
    %2 = vector.load %arg2[%c0_2, %c0_3] : memref<1x256xi32, #tpu.memory_space<vmem>>, vector<1x256xi32>
    %c0_4 = arith.constant 0 : index
    %c0_5 = arith.constant 0 : index
    %3 = vector.load %arg3[%c0_4, %c0_5] : memref<16x4xf32, #tpu.memory_space<vmem>>, vector<16x4xf32>
    %cst = arith.constant dense<0.000000e+00> : vector<16x256xf32>
    %4 = tpu.matmul %3, %1, %cst {dimension_numbers = #tpu.dot_dimension_numbers<[1], [0], [0], [1], [0, 0, 1, 1], [], []>} : vector<16x4xf32>, vector<4x256xf32>, vector<16x256xf32> -> vector<16x256xf32>
    %c0_6 = arith.constant 0 : index
    %c0_7 = arith.constant 0 : index
    %5 = vector.load %arg4[%c0_6, %c0_7] : memref<16x1xf32, #tpu.memory_space<vmem>>, vector<16x1xf32>
    %6 = vector.broadcast %5 : vector<16x1xf32> to vector<16x256xf32>
    %7 = arith.addf %4, %6 : vector<16x256xf32>
    %cst_8 = arith.constant 0.000000e+00 : f32
    %8 = vector.broadcast %cst_8 : f32 to vector<16x256xf32>
    %9 = arith.maximumf %7, %8 : vector<16x256xf32>
    %10 = vector.extract_strided_slice %9 {offsets = [0, 0], sizes = [8, 256], strides = [1, 1]} : vector<16x256xf32> to vector<8x256xf32>
    %c0_9 = arith.constant 0 : index
    %c0_10 = arith.constant 0 : index
    %c0_11 = arith.constant 0 : index
    %11 = vector.load %arg11[%c0_9, %c0_10, %c0_11] : memref<1x32x256xf32, #tpu.memory_space<vmem>>, vector<1x8x256xf32>
    %12 = vector.shape_cast %11 : vector<1x8x256xf32> to vector<8x256xf32>
    %13 = vector.shape_cast %10 : vector<8x256xf32> to vector<1x8x256xf32>
    tpu.vector_store %arg11[%c0_9, %c0_10, %c0_11], %13 {strides = array<i32>} : memref<1x32x256xf32, #tpu.memory_space<vmem>>, vector<1x8x256xf32>,
    %14 = vector.extract_strided_slice %9 {offsets = [8, 0], sizes = [8, 256], strides = [1, 1]} : vector<16x256xf32> to vector<8x256xf32>
    %cst_12 = arith.constant 0.000000e+00 : f32
    %15 = vector.broadcast %cst_12 : f32 to vector<8x128xf32>
    %c0_13 = arith.constant 0 : index
    %c0_14 = arith.constant 0 : index
    %16 = vector.load %arg12[%c0_13, %c0_14] : memref<8x512xf32, #tpu.memory_space<vmem>>, vector<8x128xf32>
    tpu.vector_store %arg12[%c0_13, %c0_14], %15 {strides = array<i32>} : memref<8x512xf32, #tpu.memory_space<vmem>>, vector<8x128xf32>,
    %c0_15 = arith.constant 0 : index
    %c128 = arith.constant 128 : index
    %17 = vector.load %arg12[%c0_15, %c128] : memref<8x512xf32, #tpu.memory_space<vmem>>, vector<8x256xf32>
    tpu.vector_store %arg12[%c0_15, %c128], %14 {strides = array<i32>} : memref<8x512xf32, #tpu.memory_space<vmem>>, vector<8x256xf32>,
    %cst_16 = arith.constant 0.000000e+00 : f32
    %18 = vector.broadcast %cst_16 : f32 to vector<8x128xf32>
    %c0_17 = arith.constant 0 : index
    %c384 = arith.constant 384 : index
    %19 = vector.load %arg12[%c0_17, %c384] : memref<8x512xf32, #tpu.memory_space<vmem>>, vector<8x128xf32>
    tpu.vector_store %arg12[%c0_17, %c384], %18 {strides = array<i32>} : memref<8x512xf32, #tpu.memory_space<vmem>>, vector<8x128xf32>,
    %20 = vector.shape_cast %2 : vector<1x256xi32> to vector<1x256xi32>
    %21 = vector.broadcast %20 : vector<1x256xi32> to vector<8x256xi32>
    %c0_i32 = arith.constant 0 : i32
    %22 = vector.broadcast %c0_i32 : i32 to vector<8x256xi32>
    %23 = arith.cmpi ne, %21, %22 : vector<8x256xi32>
    %c15_i32 = arith.constant 15 : i32
    %24 = vector.broadcast %c15_i32 : i32 to vector<8x256xi32>
    %25 = arith.cmpi ne, %21, %24 : vector<8x256xi32>
    %c0_18 = arith.constant 0 : index
    %c111 = arith.constant 111 : index
    %26 = vector.load %arg12[%c0_18, %c111] : memref<8x512xf32, #tpu.memory_space<vmem>>, vector<8x256xf32>
    %cst_19 = arith.constant 0.000000e+00 : f32
    %27 = vector.broadcast %cst_19 : f32 to vector<8x256xf32>
    %28 = arith.select %23, %26, %27 : vector<8x256xi1>, vector<8x256xf32>
    %c0_20 = arith.constant 0 : index
    %c112 = arith.constant 112 : index
    %29 = vector.load %arg12[%c0_20, %c112] : memref<8x512xf32, #tpu.memory_space<vmem>>, vector<8x256xf32>
    %c0_21 = arith.constant 0 : index
    %c113 = arith.constant 113 : index
    %30 = vector.load %arg12[%c0_21, %c113] : memref<8x512xf32, #tpu.memory_space<vmem>>, vector<8x256xf32>
    %cst_22 = arith.constant 0.000000e+00 : f32
    %31 = vector.broadcast %cst_22 : f32 to vector<8x256xf32>
    %32 = arith.select %25, %30, %31 : vector<8x256xi1>, vector<8x256xf32>
    %c0_23 = arith.constant 0 : index
    %c127 = arith.constant 127 : index
    %33 = vector.load %arg12[%c0_23, %c127] : memref<8x512xf32, #tpu.memory_space<vmem>>, vector<8x256xf32>
    %cst_24 = arith.constant 0.000000e+00 : f32
    %34 = vector.broadcast %cst_24 : f32 to vector<8x256xf32>
    %35 = arith.select %23, %33, %34 : vector<8x256xi1>, vector<8x256xf32>
    %c0_25 = arith.constant 0 : index
    %c128_26 = arith.constant 128 : index
    %36 = vector.load %arg12[%c0_25, %c128_26] : memref<8x512xf32, #tpu.memory_space<vmem>>, vector<8x256xf32>
    %c0_27 = arith.constant 0 : index
    %c129 = arith.constant 129 : index
    %37 = vector.load %arg12[%c0_27, %c129] : memref<8x512xf32, #tpu.memory_space<vmem>>, vector<8x256xf32>
    %cst_28 = arith.constant 0.000000e+00 : f32
    %38 = vector.broadcast %cst_28 : f32 to vector<8x256xf32>
    %39 = arith.select %25, %37, %38 : vector<8x256xi1>, vector<8x256xf32>
    %c0_29 = arith.constant 0 : index
    %c143 = arith.constant 143 : index
    %40 = vector.load %arg12[%c0_29, %c143] : memref<8x512xf32, #tpu.memory_space<vmem>>, vector<8x256xf32>
    %cst_30 = arith.constant 0.000000e+00 : f32
    %41 = vector.broadcast %cst_30 : f32 to vector<8x256xf32>
    %42 = arith.select %23, %40, %41 : vector<8x256xi1>, vector<8x256xf32>
    %c0_31 = arith.constant 0 : index
    %c144 = arith.constant 144 : index
    %43 = vector.load %arg12[%c0_31, %c144] : memref<8x512xf32, #tpu.memory_space<vmem>>, vector<8x256xf32>
    %c0_32 = arith.constant 0 : index
    %c145 = arith.constant 145 : index
    %44 = vector.load %arg12[%c0_32, %c145] : memref<8x512xf32, #tpu.memory_space<vmem>>, vector<8x256xf32>
    %cst_33 = arith.constant 0.000000e+00 : f32
    %45 = vector.broadcast %cst_33 : f32 to vector<8x256xf32>
    %46 = arith.select %25, %44, %45 : vector<8x256xi1>, vector<8x256xf32>
    %47 = tpu.concatenate %28, %29, %32, %35, %36, %39, %42, %43, %46 in 0 : vector<8x256xf32>, vector<8x256xf32>, vector<8x256xf32>, vector<8x256xf32>, vector<8x256xf32>, vector<8x256xf32>, vector<8x256xf32>, vector<8x256xf32>, vector<8x256xf32> -> vector<72x256xf32>
    %c0_34 = arith.constant 0 : index
    %c0_35 = arith.constant 0 : index
    %48 = vector.load %arg5[%c0_34, %c0_35] : memref<16x72xf32, #tpu.memory_space<vmem>>, vector<16x72xf32>
    %cst_36 = arith.constant dense<0.000000e+00> : vector<16x256xf32>
    %49 = tpu.matmul %48, %47, %cst_36 {dimension_numbers = #tpu.dot_dimension_numbers<[1], [0], [0], [1], [0, 0, 1, 1], [], []>} : vector<16x72xf32>, vector<72x256xf32>, vector<16x256xf32> -> vector<16x256xf32>
    %c0_37 = arith.constant 0 : index
    %c0_38 = arith.constant 0 : index
    %50 = vector.load %arg6[%c0_37, %c0_38] : memref<16x1xf32, #tpu.memory_space<vmem>>, vector<16x1xf32>
    %51 = vector.broadcast %50 : vector<16x1xf32> to vector<16x256xf32>
    %52 = arith.addf %49, %51 : vector<16x256xf32>
    %cst_39 = arith.constant 0.000000e+00 : f32
    %53 = vector.broadcast %cst_39 : f32 to vector<16x256xf32>
    %54 = arith.maximumf %52, %53 : vector<16x256xf32>
    %55 = vector.extract_strided_slice %54 {offsets = [0, 0], sizes = [8, 256], strides = [1, 1]} : vector<16x256xf32> to vector<8x256xf32>
    %c0_40 = arith.constant 0 : index
    %c8 = arith.constant 8 : index
    %c0_41 = arith.constant 0 : index
    %56 = vector.load %arg11[%c0_40, %c8, %c0_41] : memref<1x32x256xf32, #tpu.memory_space<vmem>>, vector<1x8x256xf32>
    %57 = vector.shape_cast %56 : vector<1x8x256xf32> to vector<8x256xf32>
    %58 = vector.shape_cast %55 : vector<8x256xf32> to vector<1x8x256xf32>
    tpu.vector_store %arg11[%c0_40, %c8, %c0_41], %58 {strides = array<i32>} : memref<1x32x256xf32, #tpu.memory_space<vmem>>, vector<1x8x256xf32>,
    %59 = vector.extract_strided_slice %54 {offsets = [8, 0], sizes = [8, 256], strides = [1, 1]} : vector<16x256xf32> to vector<8x256xf32>
    %cst_42 = arith.constant 0.000000e+00 : f32
    %60 = vector.broadcast %cst_42 : f32 to vector<8x128xf32>
    %c0_43 = arith.constant 0 : index
    %c0_44 = arith.constant 0 : index
    %61 = vector.load %arg13[%c0_43, %c0_44] : memref<8x512xf32, #tpu.memory_space<vmem>>, vector<8x128xf32>
    tpu.vector_store %arg13[%c0_43, %c0_44], %60 {strides = array<i32>} : memref<8x512xf32, #tpu.memory_space<vmem>>, vector<8x128xf32>,
    %c0_45 = arith.constant 0 : index
    %c128_46 = arith.constant 128 : index
    %62 = vector.load %arg13[%c0_45, %c128_46] : memref<8x512xf32, #tpu.memory_space<vmem>>, vector<8x256xf32>
    tpu.vector_store %arg13[%c0_45, %c128_46], %59 {strides = array<i32>} : memref<8x512xf32, #tpu.memory_space<vmem>>, vector<8x256xf32>,
    %cst_47 = arith.constant 0.000000e+00 : f32
    %63 = vector.broadcast %cst_47 : f32 to vector<8x128xf32>
    %c0_48 = arith.constant 0 : index
    %c384_49 = arith.constant 384 : index
    %64 = vector.load %arg13[%c0_48, %c384_49] : memref<8x512xf32, #tpu.memory_space<vmem>>, vector<8x128xf32>
    tpu.vector_store %arg13[%c0_48, %c384_49], %63 {strides = array<i32>} : memref<8x512xf32, #tpu.memory_space<vmem>>, vector<8x128xf32>,
    %65 = vector.shape_cast %2 : vector<1x256xi32> to vector<1x256xi32>
    %66 = vector.broadcast %65 : vector<1x256xi32> to vector<8x256xi32>
    %c0_i32_50 = arith.constant 0 : i32
    %67 = vector.broadcast %c0_i32_50 : i32 to vector<8x256xi32>
    %68 = arith.cmpi ne, %66, %67 : vector<8x256xi32>
    %c15_i32_51 = arith.constant 15 : i32
    %69 = vector.broadcast %c15_i32_51 : i32 to vector<8x256xi32>
    %70 = arith.cmpi ne, %66, %69 : vector<8x256xi32>
    %c0_52 = arith.constant 0 : index
    %c111_53 = arith.constant 111 : index
    %71 = vector.load %arg13[%c0_52, %c111_53] : memref<8x512xf32, #tpu.memory_space<vmem>>, vector<8x256xf32>
    %cst_54 = arith.constant 0.000000e+00 : f32
    %72 = vector.broadcast %cst_54 : f32 to vector<8x256xf32>
    %73 = arith.select %68, %71, %72 : vector<8x256xi1>, vector<8x256xf32>
    %c0_55 = arith.constant 0 : index
    %c112_56 = arith.constant 112 : index
    %74 = vector.load %arg13[%c0_55, %c112_56] : memref<8x512xf32, #tpu.memory_space<vmem>>, vector<8x256xf32>
    %c0_57 = arith.constant 0 : index
    %c113_58 = arith.constant 113 : index
    %75 = vector.load %arg13[%c0_57, %c113_58] : memref<8x512xf32, #tpu.memory_space<vmem>>, vector<8x256xf32>
    %cst_59 = arith.constant 0.000000e+00 : f32
    %76 = vector.broadcast %cst_59 : f32 to vector<8x256xf32>
    %77 = arith.select %70, %75, %76 : vector<8x256xi1>, vector<8x256xf32>
    %c0_60 = arith.constant 0 : index
    %c127_61 = arith.constant 127 : index
    %78 = vector.load %arg13[%c0_60, %c127_61] : memref<8x512xf32, #tpu.memory_space<vmem>>, vector<8x256xf32>
    %cst_62 = arith.constant 0.000000e+00 : f32
    %79 = vector.broadcast %cst_62 : f32 to vector<8x256xf32>
    %80 = arith.select %68, %78, %79 : vector<8x256xi1>, vector<8x256xf32>
    %c0_63 = arith.constant 0 : index
    %c128_64 = arith.constant 128 : index
    %81 = vector.load %arg13[%c0_63, %c128_64] : memref<8x512xf32, #tpu.memory_space<vmem>>, vector<8x256xf32>
    %c0_65 = arith.constant 0 : index
    %c129_66 = arith.constant 129 : index
    %82 = vector.load %arg13[%c0_65, %c129_66] : memref<8x512xf32, #tpu.memory_space<vmem>>, vector<8x256xf32>
    %cst_67 = arith.constant 0.000000e+00 : f32
    %83 = vector.broadcast %cst_67 : f32 to vector<8x256xf32>
    %84 = arith.select %70, %82, %83 : vector<8x256xi1>, vector<8x256xf32>
    %c0_68 = arith.constant 0 : index
    %c143_69 = arith.constant 143 : index
    %85 = vector.load %arg13[%c0_68, %c143_69] : memref<8x512xf32, #tpu.memory_space<vmem>>, vector<8x256xf32>
    %cst_70 = arith.constant 0.000000e+00 : f32
    %86 = vector.broadcast %cst_70 : f32 to vector<8x256xf32>
    %87 = arith.select %68, %85, %86 : vector<8x256xi1>, vector<8x256xf32>
    %c0_71 = arith.constant 0 : index
    %c144_72 = arith.constant 144 : index
    %88 = vector.load %arg13[%c0_71, %c144_72] : memref<8x512xf32, #tpu.memory_space<vmem>>, vector<8x256xf32>
    %c0_73 = arith.constant 0 : index
    %c145_74 = arith.constant 145 : index
    %89 = vector.load %arg13[%c0_73, %c145_74] : memref<8x512xf32, #tpu.memory_space<vmem>>, vector<8x256xf32>
    %cst_75 = arith.constant 0.000000e+00 : f32
    %90 = vector.broadcast %cst_75 : f32 to vector<8x256xf32>
    %91 = arith.select %70, %89, %90 : vector<8x256xi1>, vector<8x256xf32>
    %92 = tpu.concatenate %73, %74, %77, %80, %81, %84, %87, %88, %91 in 0 : vector<8x256xf32>, vector<8x256xf32>, vector<8x256xf32>, vector<8x256xf32>, vector<8x256xf32>, vector<8x256xf32>, vector<8x256xf32>, vector<8x256xf32>, vector<8x256xf32> -> vector<72x256xf32>
    %c0_76 = arith.constant 0 : index
    %c0_77 = arith.constant 0 : index
    %93 = vector.load %arg7[%c0_76, %c0_77] : memref<8x72xf32, #tpu.memory_space<vmem>>, vector<8x72xf32>
    %cst_78 = arith.constant dense<0.000000e+00> : vector<8x256xf32>
    %94 = tpu.matmul %93, %92, %cst_78 {dimension_numbers = #tpu.dot_dimension_numbers<[1], [0], [0], [1], [0, 0, 1, 1], [], []>} : vector<8x72xf32>, vector<72x256xf32>, vector<8x256xf32> -> vector<8x256xf32>
    %c0_79 = arith.constant 0 : index
    %c0_80 = arith.constant 0 : index
    %95 = vector.load %arg8[%c0_79, %c0_80] : memref<8x1xf32, #tpu.memory_space<vmem>>, vector<8x1xf32>
    %96 = vector.broadcast %95 : vector<8x1xf32> to vector<8x256xf32>
    %97 = arith.addf %94, %96 : vector<8x256xf32>
    %cst_81 = arith.constant 0.000000e+00 : f32
    %98 = vector.broadcast %cst_81 : f32 to vector<8x256xf32>
    %99 = arith.maximumf %97, %98 : vector<8x256xf32>
    %c0_82 = arith.constant 0 : index
    %c16 = arith.constant 16 : index
    %c0_83 = arith.constant 0 : index
    %100 = vector.load %arg11[%c0_82, %c16, %c0_83] : memref<1x32x256xf32, #tpu.memory_space<vmem>>, vector<1x8x256xf32>
    %101 = vector.shape_cast %100 : vector<1x8x256xf32> to vector<8x256xf32>
    %102 = vector.shape_cast %99 : vector<8x256xf32> to vector<1x8x256xf32>
    tpu.vector_store %arg11[%c0_82, %c16, %c0_83], %102 {strides = array<i32>} : memref<1x32x256xf32, #tpu.memory_space<vmem>>, vector<1x8x256xf32>,
    %cst_84 = arith.constant 0xFF800000 : f32
    %103 = vector.broadcast %cst_84 : f32 to vector<4x128xf32>
    %c0_85 = arith.constant 0 : index
    %c0_86 = arith.constant 0 : index
    %104 = vector.load %arg14[%c0_85, %c0_86] : memref<4x512xf32, #tpu.memory_space<vmem>>, vector<4x128xf32>
    tpu.vector_store %arg14[%c0_85, %c0_86], %103 {strides = array<i32>} : memref<4x512xf32, #tpu.memory_space<vmem>>, vector<4x128xf32>,
    %c0_87 = arith.constant 0 : index
    %c128_88 = arith.constant 128 : index
    %105 = vector.load %arg14[%c0_87, %c128_88] : memref<4x512xf32, #tpu.memory_space<vmem>>, vector<4x256xf32>
    tpu.vector_store %arg14[%c0_87, %c128_88], %1 {strides = array<i32>} : memref<4x512xf32, #tpu.memory_space<vmem>>, vector<4x256xf32>,
    %cst_89 = arith.constant 0xFF800000 : f32
    %106 = vector.broadcast %cst_89 : f32 to vector<4x128xf32>
    %c0_90 = arith.constant 0 : index
    %c384_91 = arith.constant 384 : index
    %107 = vector.load %arg14[%c0_90, %c384_91] : memref<4x512xf32, #tpu.memory_space<vmem>>, vector<4x128xf32>
    tpu.vector_store %arg14[%c0_90, %c384_91], %106 {strides = array<i32>} : memref<4x512xf32, #tpu.memory_space<vmem>>, vector<4x128xf32>,
    %108 = vector.shape_cast %2 : vector<1x256xi32> to vector<1x256xi32>
    %109 = vector.broadcast %108 : vector<1x256xi32> to vector<4x256xi32>
    %c0_i32_92 = arith.constant 0 : i32
    %110 = vector.broadcast %c0_i32_92 : i32 to vector<4x256xi32>
    %111 = arith.cmpi ne, %109, %110 : vector<4x256xi32>
    %c15_i32_93 = arith.constant 15 : i32
    %112 = vector.broadcast %c15_i32_93 : i32 to vector<4x256xi32>
    %113 = arith.cmpi ne, %109, %112 : vector<4x256xi32>
    %c0_94 = arith.constant 0 : index
    %c111_95 = arith.constant 111 : index
    %114 = vector.load %arg14[%c0_94, %c111_95] : memref<4x512xf32, #tpu.memory_space<vmem>>, vector<4x256xf32>
    %cst_96 = arith.constant 0xFF800000 : f32
    %115 = vector.broadcast %cst_96 : f32 to vector<4x256xf32>
    %116 = arith.select %111, %114, %115 : vector<4x256xi1>, vector<4x256xf32>
    %c0_97 = arith.constant 0 : index
    %c112_98 = arith.constant 112 : index
    %117 = vector.load %arg14[%c0_97, %c112_98] : memref<4x512xf32, #tpu.memory_space<vmem>>, vector<4x256xf32>
    %c0_99 = arith.constant 0 : index
    %c113_100 = arith.constant 113 : index
    %118 = vector.load %arg14[%c0_99, %c113_100] : memref<4x512xf32, #tpu.memory_space<vmem>>, vector<4x256xf32>
    %cst_101 = arith.constant 0xFF800000 : f32
    %119 = vector.broadcast %cst_101 : f32 to vector<4x256xf32>
    %120 = arith.select %113, %118, %119 : vector<4x256xi1>, vector<4x256xf32>
    %c0_102 = arith.constant 0 : index
    %c127_103 = arith.constant 127 : index
    %121 = vector.load %arg14[%c0_102, %c127_103] : memref<4x512xf32, #tpu.memory_space<vmem>>, vector<4x256xf32>
    %cst_104 = arith.constant 0xFF800000 : f32
    %122 = vector.broadcast %cst_104 : f32 to vector<4x256xf32>
    %123 = arith.select %111, %121, %122 : vector<4x256xi1>, vector<4x256xf32>
    %c0_105 = arith.constant 0 : index
    %c128_106 = arith.constant 128 : index
    %124 = vector.load %arg14[%c0_105, %c128_106] : memref<4x512xf32, #tpu.memory_space<vmem>>, vector<4x256xf32>
    %c0_107 = arith.constant 0 : index
    %c129_108 = arith.constant 129 : index
    %125 = vector.load %arg14[%c0_107, %c129_108] : memref<4x512xf32, #tpu.memory_space<vmem>>, vector<4x256xf32>
    %cst_109 = arith.constant 0xFF800000 : f32
    %126 = vector.broadcast %cst_109 : f32 to vector<4x256xf32>
    %127 = arith.select %113, %125, %126 : vector<4x256xi1>, vector<4x256xf32>
    %c0_110 = arith.constant 0 : index
    %c143_111 = arith.constant 143 : index
    %128 = vector.load %arg14[%c0_110, %c143_111] : memref<4x512xf32, #tpu.memory_space<vmem>>, vector<4x256xf32>
    %cst_112 = arith.constant 0xFF800000 : f32
    %129 = vector.broadcast %cst_112 : f32 to vector<4x256xf32>
    %130 = arith.select %111, %128, %129 : vector<4x256xi1>, vector<4x256xf32>
    %c0_113 = arith.constant 0 : index
    %c144_114 = arith.constant 144 : index
    %131 = vector.load %arg14[%c0_113, %c144_114] : memref<4x512xf32, #tpu.memory_space<vmem>>, vector<4x256xf32>
    %c0_115 = arith.constant 0 : index
    %c145_116 = arith.constant 145 : index
    %132 = vector.load %arg14[%c0_115, %c145_116] : memref<4x512xf32, #tpu.memory_space<vmem>>, vector<4x256xf32>
    %cst_117 = arith.constant 0xFF800000 : f32
    %133 = vector.broadcast %cst_117 : f32 to vector<4x256xf32>
    %134 = arith.select %113, %132, %133 : vector<4x256xi1>, vector<4x256xf32>
    %135 = arith.maximumf %116, %117 : vector<4x256xf32>
    %136 = arith.maximumf %135, %120 : vector<4x256xf32>
    %137 = arith.maximumf %136, %123 : vector<4x256xf32>
    %138 = arith.maximumf %137, %124 : vector<4x256xf32>
    %139 = arith.maximumf %138, %127 : vector<4x256xf32>
    %140 = arith.maximumf %139, %130 : vector<4x256xf32>
    %141 = arith.maximumf %140, %131 : vector<4x256xf32>
    %142 = arith.maximumf %141, %134 : vector<4x256xf32>
    %c0_118 = arith.constant 0 : index
    %c0_119 = arith.constant 0 : index
    %143 = vector.load %arg9[%c0_118, %c0_119] : memref<8x4xf32, #tpu.memory_space<vmem>>, vector<8x4xf32>
    %cst_120 = arith.constant dense<0.000000e+00> : vector<8x256xf32>
    %144 = tpu.matmul %143, %142, %cst_120 {dimension_numbers = #tpu.dot_dimension_numbers<[1], [0], [0], [1], [0, 0, 1, 1], [], []>} : vector<8x4xf32>, vector<4x256xf32>, vector<8x256xf32> -> vector<8x256xf32>
    %c0_121 = arith.constant 0 : index
    %c0_122 = arith.constant 0 : index
    %145 = vector.load %arg10[%c0_121, %c0_122] : memref<8x1xf32, #tpu.memory_space<vmem>>, vector<8x1xf32>
    %146 = vector.broadcast %145 : vector<8x1xf32> to vector<8x256xf32>
    %147 = arith.addf %144, %146 : vector<8x256xf32>
    %cst_123 = arith.constant 0.000000e+00 : f32
    %148 = vector.broadcast %cst_123 : f32 to vector<8x256xf32>
    %149 = arith.maximumf %147, %148 : vector<8x256xf32>
    %c0_124 = arith.constant 0 : index
    %c24 = arith.constant 24 : index
    %c0_125 = arith.constant 0 : index
    %150 = vector.load %arg11[%c0_124, %c24, %c0_125] : memref<1x32x256xf32, #tpu.memory_space<vmem>>, vector<1x8x256xf32>
    %151 = vector.shape_cast %150 : vector<1x8x256xf32> to vector<8x256xf32>
    %152 = vector.shape_cast %149 : vector<8x256xf32> to vector<1x8x256xf32>
    tpu.vector_store %arg11[%c0_124, %c24, %c0_125], %152 {strides = array<i32>} : memref<1x32x256xf32, #tpu.memory_space<vmem>>, vector<1x8x256xf32>,
    return
  }
  func.func @transform_0(%arg0: i32) -> (i32, i32, i32) {
    %c0_i32 = arith.constant 0 : i32
    %c0_i32_0 = arith.constant 0 : i32
    %c0_i32_1 = arith.constant 0 : i32
    return %arg0, %c0_i32, %c0_i32_0 : i32, i32, i32
  }
  func.func @transform_1(%arg0: i32) -> (i32, i32) {
    %c0_i32 = arith.constant 0 : i32
    %c0_i32_0 = arith.constant 0 : i32
    %c0_i32_1 = arith.constant 0 : i32
    return %c0_i32, %c0_i32_0 : i32, i32
  }
  func.func @transform_2(%arg0: i32) -> (i32, i32) {
    %c0_i32 = arith.constant 0 : i32
    %c0_i32_0 = arith.constant 0 : i32
    %c0_i32_1 = arith.constant 0 : i32
    return %c0_i32, %c0_i32_0 : i32, i32
  }
  func.func @transform_3(%arg0: i32) -> (i32, i32) {
    %c0_i32 = arith.constant 0 : i32
    %c0_i32_0 = arith.constant 0 : i32
    %c0_i32_1 = arith.constant 0 : i32
    return %c0_i32, %c0_i32_0 : i32, i32
  }
  func.func @transform_4(%arg0: i32) -> (i32, i32) {
    %c0_i32 = arith.constant 0 : i32
    %c0_i32_0 = arith.constant 0 : i32
    %c0_i32_1 = arith.constant 0 : i32
    return %c0_i32, %c0_i32_0 : i32, i32
  }
  func.func @transform_5(%arg0: i32) -> (i32, i32) {
    %c0_i32 = arith.constant 0 : i32
    %c0_i32_0 = arith.constant 0 : i32
    %c0_i32_1 = arith.constant 0 : i32
    return %c0_i32, %c0_i32_0 : i32, i32
  }
  func.func @transform_6(%arg0: i32) -> (i32, i32) {
    %c0_i32 = arith.constant 0 : i32
    %c0_i32_0 = arith.constant 0 : i32
    %c0_i32_1 = arith.constant 0 : i32
    return %c0_i32, %c0_i32_0 : i32, i32
  }
  func.func @transform_7(%arg0: i32) -> (i32, i32) {
    %c0_i32 = arith.constant 0 : i32
    %c0_i32_0 = arith.constant 0 : i32
    %c0_i32_1 = arith.constant 0 : i32
    return %c0_i32, %c0_i32_0 : i32, i32
  }
  func.func @transform_8(%arg0: i32) -> (i32, i32) {
    %c0_i32 = arith.constant 0 : i32
    %c0_i32_0 = arith.constant 0 : i32
    %c0_i32_1 = arith.constant 0 : i32
    return %c0_i32, %c0_i32_0 : i32, i32
  }
  func.func @transform_9(%arg0: i32) -> (i32, i32) {
    %c0_i32 = arith.constant 0 : i32
    %c0_i32_0 = arith.constant 0 : i32
    %c0_i32_1 = arith.constant 0 : i32
    return %c0_i32, %c0_i32_0 : i32, i32
  }
  func.func @transform_10(%arg0: i32) -> (i32, i32, i32) {
    %c0_i32 = arith.constant 0 : i32
    %c0_i32_0 = arith.constant 0 : i32
    %c0_i32_1 = arith.constant 0 : i32
    return %arg0, %c0_i32, %c0_i32_0 : i32, i32, i32
  }
}

</mosaic_0001>

<bundles_post_ra>
// kernel: inception_v2_module_a.1
= control target key start
LH: loop header
LB: loop body
LE: loop exit
PB: predicated region body
PF: predicated region fallthrough
CT: control target
= control target key end

     0   :  { %s1323_s13 = smov 0   ;;  %s1753_s0 = inlined_call_operand.vmem [shape: f32[2,4,256], index: 0, kind: input, shape index: {}]   ;;  %s1754_s1 = inlined_call_operand.vmem [shape: s32[1,256], index: 1, kind: input, shape index: {}]   ;;  %s1755_s2 = inlined_call_operand.vmem [shape: f32[16,4], index: 2, kind: input, shape index: {}]   ;;  %s1756_s3 = inlined_call_operand.vmem [shape: f32[16,1], index: 3, kind: input, shape index: {}]   ;;  %s1757_s4 = inlined_call_operand.vmem [shape: f32[16,72], index: 4, kind: input, shape index: {}]   ;;  %s1758_s5 = inlined_call_operand.vmem [shape: f32[16,1], index: 5, kind: input, shape index: {}]   ;;  %s1759_s6 = inlined_call_operand.vmem [shape: f32[8,72], index: 6, kind: input, shape index: {}]   ;;  %s1760_s7 = inlined_call_operand.vmem [shape: f32[8,1], index: 7, kind: input, shape index: {}]   ;;  %s1761_s8 = inlined_call_operand.vmem [shape: f32[8,4], index: 8, kind: input, shape index: {}]   ;;  %s1762_s9 = inlined_call_operand.vmem [shape: f32[8,1], index: 9, kind: input, shape index: {}]   ;;  %s1763_s10 = inlined_call_operand.vmem [shape: f32[2,32,256], index: 10, kind: output, shape index: {}]  }
   0x1 LB: > { %s1169_s14 = sadd.s32 4294967295, %s1255_s13   ;;  %p1173_p0 = scmp.ge.s32.totalorder %s1255_s13, 1  ;;  %s1255_s13 = sphi %s1323_s13, %s20_s13  }
   0x2   : > { %p312_p1 = scmp.lt.s32.totalorder %s1255_s13, 3 }
   0x4   : > { %p313_p2 = pnand %p1173_p0, %p312_p1 }
   0x5   : > { %p350_p3 = scmp.lt.s32.totalorder (!%p313_p2), %s1169_s14, 1  ;;  %s1259_s17 = smov (!%p313_p2), 111  }
   0x6   : > { %316 = sbr.rel (%p313_p2) target bundleno = 931 (0x3a3), region = 60  ;;  %s1260_s22 = smov (!%p313_p2), 112  }
   0x7   : > { %s1261_s27 = smov (!%p313_p2), 127   ;;  %s1262_s28 = smov (!%p313_p2), 113  }
   0x8   : > { %s1263_s29 = smov (!%p313_p2), 1   ;;  %s1264_s30 = smov (!%p313_p2), 15  }
   0x9   : > { %s1265_s11 = smov (!%p313_p2), 16   ;;  %s1266_s12 = smov (!%p313_p2), 17  }
   0xb   : > { %v1257_v0 = vmov 0.0   ;;  %v365_v1 = vld [vmem:[%s1756_s3 + $0x8] sm:$0xff]  ;;  %s1765_s14 = smov (!%p350_p3, %s1169_s14), 1  ;;  %v1258_v2 = vmov 0   ;;  %vm385_vm0 = vcmask 1043456   ;;  %v362_v5 = vld [vmem:[%s1755_s2] sm:$0xff]  ;;  %v477_v29 = vlaneseq }
   0xc   : > { %454 = vmatprep.mubr.f32.mxu0 %v1257_v0  ;;  %686 = vmatprep.mubr.f32.mxu1 %v1257_v0  ;;  %s1214_s18 = sshll.u32 %s1765_s14, 3  ;;  %vm378_vm1 = vcmask 31744   ;;  %v363_v6 = vld [vmem:[%s1755_s2 + $0x8] sm:$0xff]  ;;  %v1267_v17 = vmov -inf   ;;  %v361_v36 = vld [vmem:[%s1754_s1] sm:$0x3] }
   0xd   : > { %1235 = vset.pattern.permute.xlu0 %v1258_v2  ;;  %570 = vrot.lane.b32.xlu1 %v1257_v0, %s1259_s17  ;;  %s354_s21 = scalar_lea.vmem %s1753_s0, %s1214_s18  ;;  %v604_v16 = vld [vmem:[%s1758_s5 + $0x8] sm:$0xff]  ;;  %898 = vst [vmem:[#allocation4] sm:$0xf] %v1267_v17  ;;  %900 = vst [vmem:[#allocation4 + $0xc] sm:$0xf] %v1267_v17  ;;  %v478_v30 = vshrl.u32 %v477_v29, 7 }
   0xe   : > { %373 = vperm.xlu0 %1235, %v365_v1   ;;  %1236 = vset.pattern.permute.xlu1 %v1258_v2  ;;  %v1344_v3 = vld [vmem:[%s354_s21] sm:$0xff]  ;;  %vm572_vm2 = vcmask 908288   ;;  %vm596_vm5 = vcmask 916480   ;;  %vm559_vm6 = vcmask 924672   ;;  %vm546_vm9 = vcmask 1039360   ;;  %s1215_s18 = sshll.u32 %s1765_s14, 6 }
   0xf   : > { %v1350_v4 = vcombine.high %v1344_v3, %v1344_v3  ;;  %899 = vst [vmem:[#allocation4 + $0x4] sm:$0xff] %v1344_v3  ;;  %v483_v33 = vsub.s32 1, %v478_v30  ;;  %v479_v37 = vsub.s32 0, %v478_v30  ;;  %vm527_vm10 = vcmask 7168   ;;  %s359_s21 = scalar_lea.vmem %s1763_s10, %s1215_s18 }
  0x10   : > { %vm514_vm11 = vcmask 121856   ;;  %vm585_vm12 = vcmask 130048   ;;  %vm501_vm13 = vcmask 138240   ;;  %vm615_vm14 = vcmask 588800  }
  0x11   : > { %594 = vrot.lane.b32.xlu1 %v1257_v0, %s1260_s22  ;;  %1178 = vmatprep.subr.msk.mxu0 %vm385_vm0, %v1350_v4  ;;  %v1467_v38 = vrot.slane %v361_v36, %v483_v33  ;;  %v1469_v41 = vrot.slane %v361_v36, %v479_v37 }
  0x12   : > { %1179 = vmatpush1.msk.msra.mxu0 %vm385_vm0, %v1344_v3  ;;  %557 = vrot.lane.b32.xlu0 %v1257_v0, %s1262_s28 }
  0x13   : > { %1180 = vmatmul.mubr.msk.f32.vlgmr.msra.gmra.mxu0 %vm378_vm1, %v362_v5  ;;  %vm488_vm3 = vcmp.ne.s32.totalorder %v1467_v38, 15  ;;  %vm487_vm4 = vcmp.ne.s32.totalorder %v1469_v41, 15  ;;  %vm486_vm7 = vcmp.ne.s32.totalorder %v1467_v38, 0  ;;  %vm485_vm8 = vcmp.ne.s32.totalorder %v1469_v41, 0 }
  0x14   : > { %460 = vmatprep.mubr.f32.mxu0 %v1257_v0  ;;  %v1424_v20 = vld [vmem:[#allocation4 + $0xc] sm:$0xf] }
  0x15   : > { %544 = vrot.lane.b32.xlu1 %v1257_v0, %s1261_s27  ;;  %v1237_v22 = vpack.i.bf16 %v1424_v20, %v1257_v0 }
  0x16   : > { %508 = vrot.lane.b32.xlu0 %v1257_v0, %s1264_s30  ;;  %v901_v18 = vld [vmem:[#allocation4] sm:$0xff]  ;;  %v902_v19 = vld [vmem:[#allocation4 + $0x8] sm:$0xf] }
  0x17   : > { %1181 = vmatmul.mubr.msk.f32.gmra.mxu0 %vm378_vm1, %v363_v6  ;;  %v905_v21 = vcombine.high %v901_v18, %v901_v18 }
  0x18   : > { %887 = vmatprep.mubr.f32.mxu0 %v1257_v0 }
  0x19   : > { %521 = vrot.lane.b32.xlu1 %v1257_v0, %s1263_s29 }
  0x7f   : > { %v571_v23 = vpop.permute.xlu1 %570 }
  0x83   : > { %v595_v24 = vpop.permute.xlu1 %594 }
  0x87   : > { %v545_v25 = vpop.permute.xlu1 %544 }
  0x89   : > { %v374_v9 = vpop.permute.xlu0 %373 }
  0x8b   : > { %v522_v27 = vpop.permute.xlu1 %521 }
  0x8d   : > { %v558_v26 = vpop.permute.xlu0 %557 }
  0x91   : > { %v509_v28 = vpop.permute.xlu0 %508 }
  0xd3   : > { %v1375_v7 = vpop.f32.mrf.mxu0 }
  0xd5   : > { %v1377_v8 = vpop.f32.mrf.mxu0 }
  0xd7   : > { %v462_v10 = vpop.f32.mrf.mxu0 }
  0xd8   : > { %v463_v11 = vadd.f32 %v462_v10, %v374_v9  ;;  %v601_v10 = vld [vmem:[%s1757_s4] sm:$0xff] }
  0xd9   : > { %v464_v13 = vpop.f32.mrf.mxu0 }
  0xda   : > { %v1379_v12 = vmax.f32 %v463_v11, 0.0  ;;  %v465_v14 = vadd.f32 %v464_v13, %v374_v9 }
  0xdc   : > { %590 = vrot.lane.b32.xlu0 %v1379_v12, %s1260_s22  ;;  %566 = vrot.lane.b32.xlu1 %v1379_v12, %s1259_s17  ;;  %v1393_v15 = vmax.f32 %v465_v14, 0.0 }
  0xe0   : > { %540 = vrot.lane.b32.xlu0 %v1379_v12, %s1261_s27  ;;  %553 = vrot.lane.b32.xlu1 %v1379_v12, %s1262_s28 }
  0xe4   : > { %510 = vrot.lane.b32.xlu0 %v1379_v12, %s1264_s30  ;;  %523 = vrot.lane.b32.xlu1 %v1379_v12, %s1263_s29 }
  0xe8   : > { %568 = vrot.lane.b32.xlu0 %v1393_v15, %s1259_s17  ;;  %581 = vrot.lane.b32.xlu1 %v1379_v12, %s1265_s11 }
  0xec   : > { %592 = vrot.lane.b32.xlu0 %v1393_v15, %s1260_s22  ;;  %555 = vrot.lane.b32.xlu1 %v1393_v15, %s1262_s28 }
  0xf0   : > { %497 = vrot.lane.b32.xlu0 %v1379_v12, %s1266_s12  ;;  %579 = vrot.lane.b32.xlu1 %v1257_v0, %s1265_s11 }
  0xf4   : > { %542 = vrot.lane.b32.xlu0 %v1393_v15, %s1261_s27  ;;  %512 = vrot.lane.b32.xlu1 %v1393_v15, %s1264_s30 }
  0xf8   : > { %525 = vrot.lane.b32.xlu0 %v1393_v15, %s1263_s29  ;;  %499 = vrot.lane.b32.xlu1 %v1393_v15, %s1266_s12 }
  0xfc   : > { %583 = vrot.lane.b32.xlu0 %v1393_v15, %s1265_s11  ;;  %612 = vperm.xlu1 %1236, %v604_v16  }
 0x100   : > { %495 = vrot.lane.b32.xlu0 %v1257_v0, %s1266_s12  ;;  %785 = vrot.lane.b32.xlu1 %v1257_v0, %s1259_s17 }
 0x104   : > { %807 = vrot.lane.b32.xlu0 %v1257_v0, %s1260_s22  ;;  %910 = vrot.lane.b32.xlu1 %v902_v19, %s1266_s12 }
 0x108   : > { %908 = vrot.lane.b32.xlu0 %v905_v21, %s1266_s12  ;;  %1238 = vrot.lane.b32.xlu1 %v1237_v22, %s1262_s28 }
 0x10c   : > { %906 = vrot.lane.b32.xlu0 %v901_v18, %s1266_s12  ;;  %986 = vrot.lane.b32.xlu1 %v905_v21, %s1265_s11 }
 0x110   : > { %988 = vrot.lane.b32.xlu0 %v902_v19, %s1265_s11  ;;  %922 = vrot.lane.b32.xlu1 %v902_v19, %s1264_s30 }
 0x114   : > { %920 = vrot.lane.b32.xlu0 %v905_v21, %s1264_s30  ;;  %918 = vrot.lane.b32.xlu1 %v901_v18, %s1264_s30 }
 0x118   : > { %984 = vrot.lane.b32.xlu0 %v901_v18, %s1265_s11  ;;  %932 = vrot.lane.b32.xlu1 %v905_v21, %s1263_s29 }
 0x11c   : > { %1243 = vrot.lane.b32.xlu0 %v1237_v22, %s1261_s27  ;;  %930 = vrot.lane.b32.xlu1 %v901_v18, %s1263_s29 }
 0x120   : > { %934 = vrot.lane.b32.xlu0 %v902_v19, %s1263_s29  ;;  %950 = vrot.lane.b32.xlu1 %v1350_v4, %s1261_s27 }
 0x124   : > { %739 = vrot.lane.b32.xlu0 %v1257_v0, %s1263_s29  ;;  %727 = vrot.lane.b32.xlu1 %v1257_v0, %s1264_s30 }
 0x128   : > { %948 = vrot.lane.b32.xlu0 %v1344_v3, %s1261_s27  ;;  %960 = vrot.lane.b32.xlu1 %v1344_v3, %s1262_s28 }
 0x12c   : > { %962 = vrot.lane.b32.xlu0 %v1350_v4, %s1262_s28  ;;  %1011 = vrot.lane.b32.xlu1 %v1350_v4, %s1260_s22 }
 0x130   : > { %793 = vrot.lane.b32.xlu0 %v1257_v0, %s1265_s11  ;;  %715 = vrot.lane.b32.xlu1 %v1257_v0, %s1266_s12 }
 0x134   : > { %1013 = vrot.lane.b32.xlu0 %v1424_v20, %s1260_s22 }
 0x14e   : > { %v591_v31 = vpop.permute.xlu0 %590  ;;  %v567_v32 = vpop.permute.xlu1 %566 }
 0x152   : > { %v541_v34 = vpop.permute.xlu0 %540  ;;  %v554_v35 = vpop.permute.xlu1 %553 }
 0x156   : > { %v511_v39 = vpop.permute.xlu0 %510  ;;  %v524_v40 = vpop.permute.xlu1 %523 }
 0x157   : > { %v528_v60 = vsel %vm527_vm10, %v522_v27, %v524_v40  ;;  %v515_v62 = vsel %vm514_vm11, %v509_v28, %v511_v39 }
 0x15a   : > { %v569_v42 = vpop.permute.xlu0 %568  ;;  %v582_v43 = vpop.permute.xlu1 %581 }
 0x15b   : > { %v574_v44 = vsel %vm572_vm2, %v569_v42, %v571_v23  ;;  %v573_v45 = vsel %vm572_vm2, %v567_v32, %v569_v42 }
 0x15c   : > { %1182 = vmatprep.subr.msk.mxu1 %vm488_vm3, %v574_v44 }
 0x15d   : > { %1183 = vmatpush1.msk.msra.mxu1 %vm487_vm4, %v573_v45 }
 0x15e   : > { %v593_v46 = vpop.permute.xlu0 %592  ;;  %v556_v47 = vpop.permute.xlu1 %555 }
 0x15f   : > { %v598_v48 = vsel %vm596_vm5, %v593_v46, %v595_v24  ;;  %v597_v49 = vsel %vm596_vm5, %v591_v31, %v593_v46  ;;  %v561_v50 = vsel %vm559_vm6, %v556_v47, %v558_v26  ;;  %v560_v51 = vsel %vm559_vm6, %v554_v35, %v556_v47 }
 0x160   : > { %638 = vmatprep.subr.mxu1 %v598_v48 }
 0x161   : > { %639 = vmatpush1.msra.mxu1 %v597_v49 }
 0x162   : > { %v498_v52 = vpop.permute.xlu0 %497  ;;  %1184 = vmatprep.subr.msk.mxu1 %vm486_vm7, %v561_v50  ;;  %v580_v53 = vpop.permute.xlu1 %579 }
 0x163   : > { %1185 = vmatpush1.msk.msra.mxu1 %vm485_vm8, %v560_v51  ;;  %v586_v5 = vsel %vm585_vm12, %v580_v53, %v582_v43 }
 0x166   : > { %v543_v54 = vpop.permute.xlu0 %542  ;;  %v513_v57 = vpop.permute.xlu1 %512 }
 0x167   : > { %v547_v55 = vsel %vm546_vm9, %v541_v34, %v543_v54  ;;  %v548_v56 = vsel %vm546_vm9, %v543_v54, %v545_v25  ;;  %v516_v61 = vsel %vm514_vm11, %v511_v39, %v513_v57 }
 0x168   : > { %1186 = vmatprep.subr.msk.mxu1 %vm488_vm3, %v548_v56 }
 0x169   : > { %1187 = vmatpush1.msk.msra.mxu1 %vm487_vm4, %v547_v55 }
 0x16a   : > { %v526_v58 = vpop.permute.xlu0 %525  ;;  %644 = vmatprep.subr.mxu1 %v1393_v15  ;;  %v500_v63 = vpop.permute.xlu1 %499 }
 0x16b   : > { %v529_v59 = vsel %vm527_vm10, %v524_v40, %v526_v58  ;;  %645 = vmatpush1.msra.mxu1 %v1379_v12  ;;  %v503_v6 = vsel %vm501_vm13, %v498_v52, %v500_v63  ;;  %v602_v12 = vld [vmem:[%s1757_s4 + $0x8] sm:$0xff] }
 0x16c   : > { %1188 = vmatprep.subr.msk.mxu1 %vm486_vm7, %v529_v59 }
 0x16d   : > { %1189 = vmatpush1.msk.msra.mxu1 %vm485_vm8, %v528_v60 }
 0x16e   : > { %v584_v1 = vpop.permute.xlu0 %583  ;;  %1190 = vmatprep.subr.msk.mxu1 %vm488_vm3, %v516_v61 }
 0x16f   : > { %1191 = vmatpush1.msk.msra.mxu1 %vm487_vm4, %v515_v62  ;;  %v587_v2 = vsel %vm585_vm12, %v582_v43, %v584_v1 }
 0x170   : > { %650 = vmatprep.subr.mxu1 %v587_v2 }
 0x171   : > { %651 = vmatpush1.msra.mxu1 %v586_v5 }
 0x172   : > { %v496_v9 = vpop.permute.xlu0 %495  ;;  %1192 = vmatprep.subr.msk.mxu1 %vm486_vm7, %v503_v6 }
 0x173   : > { %v502_v11 = vsel %vm501_vm13, %v496_v9, %v498_v52  ;;  %v364_v9 = vld [vmem:[%s1756_s3] sm:$0xff] }
 0x174   : > { %1193 = vmatpush1.msk.msra.mxu1 %vm485_vm8, %v502_v11 }
 0x175   : > { %1194 = vmatmul.mubr.msk.f32.vlgmr.msra.gmra.mxu1 %vm615_vm14, %v601_v10  ;;  %v814_v10 = vld [vmem:[%s1760_s7] sm:$0xff] }
 0x176   : > { %692 = vmatprep.mubr.f32.mxu1 %v1257_v0  ;;  %v1526_v13 = vpop.permute.xlu0 %807 }
 0x177   : > { %v613_v14 = vpop.permute.xlu1 %612 }
 0x179   : > { %1195 = vmatmul.mubr.msk.f32.gmra.mxu1 %vm615_vm14, %v602_v12 }
 0x17a   : > { %v909_v15 = vpop.permute.xlu0 %908 }
 0x17b   : > { %v1528_v16 = vpop.permute.xlu1 %785 }
 0x17e   : > { %v907_v17 = vpop.permute.xlu0 %906 }
 0x17f   : > { %v912_v18 = vsel %vm501_vm13, %v907_v17, %v909_v15  ;;  %v911_v19 = vpop.permute.xlu1 %910 }
 0x180   : > { %v913_v22 = vsel %vm501_vm13, %v909_v15, %v911_v19  ;;  %v1538_v25 = vsel %vm485_vm8, %v912_v18, -inf }
 0x181   : > { %v917_v30 = vsel %vm486_vm7, %v913_v22, -inf }
 0x182   : > { %v989_v21 = vpop.permute.xlu0 %988 }
 0x183   : > { %v1532_v23 = vpop.permute.xlu1 %1238 }
 0x184   : > { %v1241_v49 = vunpack.i.h.bf16 %v1532_v23 }
 0x186   : > { %v1534_v24 = vpop.permute.xlu0 %920 }
 0x187   : > { %v987_v26 = vpop.permute.xlu1 %986 }
 0x188   : > { %v991_v31 = vsel %vm585_vm12, %v987_v26, %v989_v21 }
 0x189   : > { %v995_v35 = vmax.f32 %v917_v30, %v991_v31 }
 0x18a   : > { %v985_v27 = vpop.permute.xlu0 %984 }
 0x18b   : > { %v1541_v28 = vsel %vm585_vm12, %v985_v27, %v987_v26  ;;  %v923_v32 = vpop.permute.xlu1 %922 }
 0x18c   : > { %v994_v29 = vmax.f32 %v1538_v25, %v1541_v28  ;;  %v925_v34 = vsel %vm514_vm11, %v1534_v24, %v923_v32 }
 0x18d   : > { %v929_v36 = vsel %vm488_vm3, %v925_v34, -inf }
 0x18e   : > { %v1548_v33 = vpop.permute.xlu0 %1243  ;;  %v997_v40 = vmax.f32 %v995_v35, %v929_v36 }
 0x18f   : > { %v1554_v37 = vpop.permute.xlu1 %918  ;;  %v1246_v50 = vunpack.i.h.bf16 %v1548_v33 }
 0x190   : > { %v924_v34 = vsel %vm514_vm11, %v1554_v37, %v1534_v24 }
 0x192   : > { %v935_v39 = vpop.permute.xlu0 %934 }
 0x193   : > { %v1556_v42 = vpop.permute.xlu1 %932 }
 0x194   : > { %v937_v44 = vsel %vm527_vm10, %v1556_v42, %v935_v39  ;;  %v928_v39 = vsel %vm487_vm4, %v924_v34, -inf }
 0x195   : > { %v941_v45 = vsel %vm486_vm7, %v937_v44, -inf  ;;  %v996_v37 = vmax.f32 %v994_v29, %v928_v39 }
 0x196   : > { %v1558_v43 = vpop.permute.xlu0 %739  ;;  %v999_v46 = vmax.f32 %v997_v40, %v941_v45 }
 0x197   : > { %v1564_v47 = vpop.permute.xlu1 %930 }
 0x198   : > { %v1004_v51 = vmax.f32 %v999_v46, %v1350_v4  ;;  %v936_v45 = vsel %vm527_vm10, %v1564_v47, %v1556_v42  ;;  %v1240_v46 = vunpack.i.l.bf16 %v1532_v23  ;;  %v1245_v47 = vunpack.i.l.bf16 %v1548_v33 }
 0x199   : > { %v940_v23 = vsel %vm485_vm8, %v936_v45, -inf }
 0x19a   : > { %v1566_v48 = vpop.permute.xlu0 %948  ;;  %v998_v25 = vmax.f32 %v996_v37, %v940_v23 }
 0x19b   : > { %v1571_v52 = vpop.permute.xlu1 %950 }
 0x19c   : > { %v955_v54 = vsel %vm546_vm9, %v1571_v52, %v1246_v50 }
 0x19d   : > { %v959_v56 = vsel %vm488_vm3, %v955_v54, -inf  ;;  %v954_v54 = vsel %vm546_vm9, %v1566_v48, %v1571_v52 }
 0x19e   : > { %v1573_v53 = vpop.permute.xlu0 %962  ;;  %v1006_v58 = vmax.f32 %v1004_v51, %v959_v56  ;;  %v1003_v56 = vmax.f32 %v998_v25, %v1344_v3 }
 0x19f   : > { %v967_v55 = vsel %vm559_vm6, %v1573_v53, %v1241_v49  ;;  %v728_v11 = vpop.permute.xlu1 %727 }
 0x1a0   : > { %v971_v57 = vsel %vm486_vm7, %v967_v55, -inf }
 0x1a1   : > { %v1583_v59 = vmax.f32 %v1006_v58, %v971_v57 }
 0x1a3   : > { %v961_v12 = vpop.permute.xlu1 %960 }
 0x1a4   : > { %v966_v52 = vsel %vm559_vm6, %v961_v12, %v1573_v53 }
 0x1a5   : > { %v970_v53 = vsel %vm485_vm8, %v966_v52, -inf }
 0x1a7   : > { %v1645_v15 = vpop.permute.xlu1 %1011 }
 0x1ab   : > { %v1647_v17 = vpop.permute.xlu1 %715 }
 0x235   : > { %v1585_v60 = vpop.f32.mrf.mxu1 }
 0x237   : > { %v1587_v61 = vpop.f32.mrf.mxu1 }
 0x239   : > { %v694_v62 = vpop.f32.mrf.mxu1 }
 0x23a   : > { %v695_v63 = vadd.f32 %v694_v62, %v613_v14 }
 0x23b   : > { %v696_v2 = vpop.f32.mrf.mxu1 }
 0x23c   : > { %v1589_v1 = vmax.f32 %v695_v63, 0.0  ;;  %v697_v5 = vadd.f32 %v696_v2, %v613_v14  ;;  %v794_v14 = vpop.permute.xlu0 %793  ;;  %v958_v63 = vsel %vm487_vm4, %v954_v54, -inf }
 0x23d   : > { %v1005_v2 = vmax.f32 %v1003_v56, %v958_v63 }
 0x23e   : > { %803 = vrot.lane.b32.xlu1 %v1589_v1, %s1260_s22  ;;  %781 = vrot.lane.b32.xlu0 %v1589_v1, %s1259_s17  ;;  %v1607_v6 = vmax.f32 %v697_v5, 0.0 }
 0x240   : > { %v1014_v18 = vpop.permute.xlu0 %1013 }
 0x242   : > { %769 = vrot.lane.b32.xlu1 %v1589_v1, %s1262_s28  ;;  %757 = vrot.lane.b32.xlu0 %v1589_v1, %s1261_s27 }
 0x246   : > { %795 = vrot.lane.b32.xlu1 %v1589_v1, %s1265_s11  ;;  %741 = vrot.lane.b32.xlu0 %v1589_v1, %s1263_s29 }
 0x24a   : > { %717 = vrot.lane.b32.xlu1 %v1589_v1, %s1266_s12  ;;  %729 = vrot.lane.b32.xlu0 %v1589_v1, %s1264_s30 }
 0x24e   : > { %805 = vrot.lane.b32.xlu1 %v1607_v6, %s1260_s22  ;;  %783 = vrot.lane.b32.xlu0 %v1607_v6, %s1259_s17 }
 0x252   : > { %759 = vrot.lane.b32.xlu1 %v1607_v6, %s1261_s27  ;;  %771 = vrot.lane.b32.xlu0 %v1607_v6, %s1262_s28 }
 0x256   : > { %743 = vrot.lane.b32.xlu1 %v1607_v6, %s1263_s29  ;;  %974 = vrot.lane.b32.xlu0 %v1350_v4, %s1259_s17  ;;  %v603_v4 = vld [vmem:[%s1758_s5] sm:$0xff] }
 0x25a   : > { %731 = vrot.lane.b32.xlu1 %v1607_v6, %s1264_s30  ;;  %797 = vrot.lane.b32.xlu0 %v1607_v6, %s1265_s11 }
 0x25e   : > { %976 = vrot.lane.b32.xlu1 %v1424_v20, %s1259_s17  ;;  %719 = vrot.lane.b32.xlu0 %v1607_v6, %s1266_s12  ;;  %v1024_v20 = vld [vmem:[%s1762_s9] sm:$0xff] }
 0x262   : > { %972 = vrot.lane.b32.xlu1 %v1344_v3, %s1259_s17  ;;  %1009 = vrot.lane.b32.xlu0 %v1344_v3, %s1260_s22  ;;  %v1016_v3 = vsel %vm596_vm5, %v1645_v15, %v1014_v18 }
 0x266   : > { %607 = vperm.xlu1 %1236, %v603_v4   ;;  %368 = vperm.xlu0 %1235, %v364_v9   ;;  %v1020_v9 = vmax.f32 %v1583_v59, %v1016_v3  ;;  %v1007_v59 = vmax.f32 %v1005_v2, %v970_v53 }
 0x26a   : > { %1027 = vperm.xlu1 %1236, %v1024_v20   ;;  %817 = vperm.xlu0 %1235, %v814_v10  }
 0x2b0   : > { %v782_v19 = vpop.permute.xlu0 %781  ;;  %v804_v21 = vpop.permute.xlu1 %803 }
 0x2b4   : > { %v758_v22 = vpop.permute.xlu0 %757  ;;  %v770_v26 = vpop.permute.xlu1 %769 }
 0x2b8   : > { %v742_v27 = vpop.permute.xlu0 %741  ;;  %v796_v30 = vpop.permute.xlu1 %795 }
 0x2b9   : > { %v745_v57 = vsel %vm527_vm10, %v1558_v43, %v742_v27  ;;  %v799_v5 = vsel %vm585_vm12, %v794_v14, %v796_v30 }
 0x2bc   : > { %v730_v31 = vpop.permute.xlu0 %729  ;;  %v718_v32 = vpop.permute.xlu1 %717 }
 0x2bd   : > { %v733_v43 = vsel %vm514_vm11, %v728_v11, %v730_v31  ;;  %v813_v11 = vld [vmem:[%s1759_s6] sm:$0xff]  ;;  %v721_v12 = vsel %vm501_vm13, %v1647_v17, %v718_v32 }
 0x2c0   : > { %v784_v35 = vpop.permute.xlu0 %783  ;;  %v806_v36 = vpop.permute.xlu1 %805 }
 0x2c1   : > { %v787_v40 = vsel %vm572_vm2, %v782_v19, %v784_v35  ;;  %v788_v44 = vsel %vm572_vm2, %v784_v35, %v1528_v16  ;;  %v810_v24 = vsel %vm596_vm5, %v806_v36, %v1526_v13  ;;  %v809_v16 = vsel %vm596_vm5, %v804_v21, %v806_v36 }
 0x2c2   : > { %1196 = vmatprep.subr.msk.mxu0 %vm488_vm3, %v788_v44 }
 0x2c3   : > { %1197 = vmatpush1.msk.msra.mxu0 %vm487_vm4, %v787_v40 }
 0x2c4   : > { %v772_v49 = vpop.permute.xlu0 %771  ;;  %839 = vmatprep.subr.mxu0 %v810_v24  ;;  %v760_v42 = vpop.permute.xlu1 %759 }
 0x2c5   : > { %v775_v50 = vsel %vm559_vm6, %v770_v26, %v772_v49  ;;  %v776_v51 = vsel %vm559_vm6, %v772_v49, %v1240_v46  ;;  %840 = vmatpush1.msra.mxu0 %v809_v16  ;;  %v764_v13 = vsel %vm546_vm9, %v760_v42, %v1245_v47  ;;  %v763_v28 = vsel %vm546_vm9, %v758_v22, %v760_v42 }
 0x2c6   : > { %1198 = vmatprep.subr.msk.mxu0 %vm486_vm7, %v776_v51 }
 0x2c7   : > { %1199 = vmatpush1.msk.msra.mxu0 %vm485_vm8, %v775_v50 }
 0x2c8   : > { %v975_v29 = vpop.permute.xlu0 %974  ;;  %v744_v33 = vpop.permute.xlu1 %743  ;;  %1200 = vmatprep.subr.msk.mxu0 %vm488_vm3, %v764_v13 }
 0x2c9   : > { %1201 = vmatpush1.msk.msra.mxu0 %vm487_vm4, %v763_v28  ;;  %v746_v55 = vsel %vm527_vm10, %v742_v27, %v744_v33 }
 0x2ca   : > { %845 = vmatprep.subr.mxu0 %v1607_v6 }
 0x2cb   : > { %846 = vmatpush1.msra.mxu0 %v1589_v1 }
 0x2cc   : > { %v798_v58 = vpop.permute.xlu0 %797  ;;  %v732_v62 = vpop.permute.xlu1 %731  ;;  %1202 = vmatprep.subr.msk.mxu0 %vm486_vm7, %v746_v55 }
 0x2cd   : > { %v734_v48 = vsel %vm514_vm11, %v730_v31, %v732_v62  ;;  %1203 = vmatpush1.msk.msra.mxu0 %vm485_vm8, %v745_v57  ;;  %v800_v1 = vsel %vm585_vm12, %v796_v30, %v798_v58  ;;  %v1023_v30 = vld [vmem:[%s1761_s8] sm:$0xff] }
 0x2ce   : > { %1204 = vmatprep.subr.msk.mxu0 %vm488_vm3, %v734_v48 }
 0x2cf   : > { %1205 = vmatpush1.msk.msra.mxu0 %vm487_vm4, %v733_v43 }
 0x2d0   : > { %v720_v6 = vpop.permute.xlu0 %719  ;;  %v977_v4 = vpop.permute.xlu1 %976  ;;  %851 = vmatprep.subr.mxu0 %v800_v1 }
 0x2d1   : > { %v722_v20 = vsel %vm501_vm13, %v718_v32, %v720_v6  ;;  %v979_v10 = vsel %vm572_vm2, %v975_v29, %v977_v4  ;;  %852 = vmatpush1.msra.mxu0 %v799_v5 }
 0x2d2   : > { %v983_v14 = vsel %vm488_vm3, %v979_v10, -inf  ;;  %1206 = vmatprep.subr.msk.mxu0 %vm486_vm7, %v722_v20 }
 0x2d3   : > { %v1022_v18 = vmax.f32 %v1020_v9, %v983_v14  ;;  %1207 = vmatpush1.msk.msra.mxu0 %vm485_vm8, %v721_v12 }
 0x2d4   : > { %v1010_v19 = vpop.permute.xlu0 %1009  ;;  %v973_v21 = vpop.permute.xlu1 %972  ;;  %1208 = vmatmul.mubr.msk.f32.vlgmr.msra.gmra.mxu0 %vm615_vm14, %v813_v11 }
 0x2d5   : > { %v1015_v22 = vsel %vm596_vm5, %v1010_v19, %v1645_v15  ;;  %v978_v17 = vsel %vm572_vm2, %v973_v21, %v975_v29  ;;  %1209 = vmatprep.subr.msk.mxu0 %vm385_vm0, %v1022_v18  ;;  %1103 = vmatprep.mubr.f32.mxu0 %v1257_v0 }
 0x2d6   : > { %v1019_v38 = vmax.f32 %v1007_v59, %v1015_v22  ;;  %v982_v26 = vsel %vm487_vm4, %v978_v17, -inf }
 0x2d8   : > { %v1021_v27 = vmax.f32 %v1019_v38, %v982_v26 }
 0x2da   : > { %1210 = vmatpush1.msk.msra.mxu0 %vm385_vm0, %v1021_v27 }
 0x2db   : > { %1211 = vmatmul.mubr.msk.f32.vlgmr.msra.gmra.mxu0 %vm378_vm1, %v1023_v30 }
 0x2e1   : > { %v369_v15 = vpop.permute.xlu0 %368  ;;  %v608_v31 = vpop.permute.xlu1 %607 }
 0x2e2   : > { %v457_v32 = vadd.f32 %v1375_v7, %v369_v15  ;;  %v459_v0 = vadd.f32 %v1377_v8, %v369_v15  ;;  %v689_v34 = vadd.f32 %v1585_v60, %v608_v31  ;;  %v691_v41 = vadd.f32 %v1587_v61, %v608_v31 }
 0x2e4   : > { %v467_v35 = vmax.f32 %v457_v32, 0.0  ;;  %v468_v36 = vmax.f32 %v459_v0, 0.0  ;;  %v699_v39 = vmax.f32 %v689_v34, 0.0  ;;  %v700_v40 = vmax.f32 %v691_v41, 0.0 }
 0x2e5   : > { %v818_v44 = vpop.permute.xlu0 %817  ;;  %v1028_v24 = vpop.permute.xlu1 %1027 }
 0x2e6   : > { %471 = vst [vmem:[%s359_s21] sm:$0xff] %v467_v35  ;;  %472 = vst [vmem:[%s359_s21 + $0x8] sm:$0xff] %v468_v36 }
 0x2e7   : > { %703 = vst [vmem:[%s359_s21 + $0x10] sm:$0xff] %v699_v39  ;;  %704 = vst [vmem:[%s359_s21 + $0x18] sm:$0xff] %v700_v40 }
 0x394   : > { %v889_v7 = vpop.f32.mrf.mxu0 }
 0x395   : > { %v890_v45 = vadd.f32 %v889_v7, %v818_v44 }
 0x396   : > { %v891_v8 = vpop.f32.mrf.mxu0 }
 0x397   : > { %v894_v46 = vmax.f32 %v890_v45, 0.0  ;;  %v892_v60 = vadd.f32 %v891_v8, %v818_v44 }
 0x399   : > { %896 = vst [vmem:[%s359_s21 + $0x20] sm:$0xff] %v894_v46  ;;  %v895_v61 = vmax.f32 %v892_v60, 0.0 }
 0x39b   : > { %897 = vst [vmem:[%s359_s21 + $0x28] sm:$0xff] %v895_v61  ;;  %v1105_v37 = vpop.f32.mrf.mxu0 }
 0x39c   : > { %v1106_v16 = vadd.f32 %v1105_v37, %v1028_v24 }
 0x39d   : > { %v1107_v49 = vpop.f32.mrf.mxu0 }
 0x39e   : > { %v1110_v42 = vmax.f32 %v1106_v16, 0.0  ;;  %v1108_v47 = vadd.f32 %v1107_v49, %v1028_v24 }
 0x3a0   : > { %1112 = vst [vmem:[%s359_s21 + $0x30] sm:$0xff] %v1110_v42  ;;  %v1111_v23 = vmax.f32 %v1108_v47, 0.0 }
 0x3a2   : > { %1113 = vst [vmem:[%s359_s21 + $0x38] sm:$0xff] %v1111_v23 }
 0x3a3 PF: > { %s20_s13 = sadd.s32 1, %s1255_s13  }
 0x3a4   : > { %p17_p4 = scmp.ge.s32.totalorder %s20_s13, 4  }
 0x3a6   :  { %19 = sbr.rel (!%p17_p4) target bundleno = 1 (0x1), region = 90 }

</bundles_post_ra>
